<compile_context>
chip_gen: v5e
topology: v5e:2x2
jax: 0.10.0
libtpu: 0.0.40
codegen_flags: <defaults>
</compile_context>

<pallas_src>
import functools

import jax
import jax.numpy as jnp
from jax.experimental import pallas as pl
from jax.experimental.pallas import tpu as pltpu

_LANE = 128
_NEG_BIG = -1e30  # logits of padded (non-existent) experts


def _round_up(n, m):
    return ((n + m - 1) // m) * m


def _cdiv(a, b):
    return (a + b - 1) // b


def _gating_kernel(n_layers, widths, inv_t, *refs):
    """refs = (x_ref, W0, W1, ..., W_{L-1}, packed_bias_ref, out_ref).

    x_ref:   [TB, input_dim]           f32 (cast to bf16 in-VMEM)
    W_i:     [prev_pad, widths[i]]     bf16
    bias:    [1, sum(widths)]          f32 (1/T folded into last chunk;
                                            padded experts = -1e30)
    out_ref: [TB, widths[-1] (=128k)]  f32/bf16
    """
    x_ref = refs[0]
    w_refs = refs[1:1 + n_layers]
    b_ref = refs[1 + n_layers]
    out_ref = refs[-1]

    # Cast in-VMEM (VPU) so the MXU sees bf16 operands; cheaper than a
    # separate XLA astype pass over x in HBM.
    h = x_ref[...].astype(jnp.bfloat16)
    off = 0
    acc = None
    for i in range(n_layers):
        # MXU matmul in bf16, accumulate in f32.
        acc = jnp.dot(h, w_refs[i][...], preferred_element_type=jnp.float32)
        if i == n_layers - 1 and inv_t != 1.0:
            acc = acc * inv_t  # f32 scale; bias already carries 1/T
        acc = acc + b_ref[:, off:off + widths[i]]  # [1, w] broadcast-add (f32)
        off += widths[i]
        if i < n_layers - 1:
            # Hidden layers: ReLU in f32 (v5e VPU has no bf16), cast back for
            # the next MXU pass.  Dropout is identity in eval mode.
            # TODO(synk): training-mode dropout is not reproduced (eval only).
            h = jnp.maximum(acc, 0.0).astype(jnp.bfloat16)

    logits = acc  # [TB, E_pad] f32; padded experts sit at -1e30 -> 0 mass
    m = jnp.max(logits, axis=-1, keepdims=True)
    e = jnp.exp(logits - m)
    denom = jnp.sum(e, axis=-1, keepdims=True)
    # approx reciprocal -> EUP slot (otherwise idle); rel err ~1e-4 is fine
    # for routing weights.
    out_ref[...] = (e * pl.reciprocal(denom, approx=True)).astype(out_ref.dtype)


def prepare_params(params, temperature=1.0, hidden_pad=_LANE):
    """One-time parameter preparation (do this at init, not per call).

    - pads every layer's output dim up to a multiple of 128 (hidden widths can
      be padded to 256 on v6e/v7x via hidden_pad=256 for full MXU width; the
      expert dim always stays at 128 to keep the output write small),
      with zero weights/bias for padded hidden units and -1e30 bias for padded
      experts,
    - folds 1/temperature into the f32 output bias only (weight scale stays in
      f32 inside the kernel, so bf16 quantization error is not amplified),
    - casts weights to bf16 for the MXU,
    - packs all biases into a single [1, total] f32 array.

    Returns (w_list_bf16, packed_bias_f32, widths, inv_t).
    """
    n = len(params)
    inv_t = 1.0 / float(temperature)
    prev_dim = params[0][0].shape[0]  # input_dim, left unpadded (K of layer 0)
    w_list, bias_chunks, widths = [], [], []
    for i, (w, b) in enumerate(params):
        in_dim, out_dim = w.shape
        if i == n - 1:
            out_pad = _round_up(out_dim, _LANE)  # experts: always 128
        else:
            pad = hidden_pad if out_dim >= _LANE else _LANE
            out_pad = _round_up(out_dim, pad)
        b = jnp.reshape(b, (1, out_dim)).astype(jnp.float32)
        if i == n - 1:
            b = b * inv_t  # fold 1/T into the f32 bias only
            b_p = jnp.full((1, out_pad), _NEG_BIG, jnp.float32)
        else:
            b_p = jnp.zeros((1, out_pad), jnp.float32)
        b_p = b_p.at[:, :out_dim].set(b)
        w_p = jnp.zeros((prev_dim, out_pad), jnp.float32)
        w_p = w_p.at[:in_dim, :out_dim].set(w.astype(jnp.float32))
        w_list.append(w_p.astype(jnp.bfloat16))
        bias_chunks.append(b_p)
        widths.append(out_pad)
        prev_dim = out_pad
    packed_bias = jnp.concatenate(bias_chunks, axis=1)
    return w_list, packed_bias, tuple(widths), inv_t


def _vmem_capacity_bytes():
    try:
        return int(pltpu.get_tpu_info().vmem_capacity_bytes)
    except Exception:
        return 64 << 20  # conservative fallback (v7x per-TC physical VMEM)


def _pick_block_rows(batch, input_dim, e_pad, resident_bytes, out_itemsize,
                     vmem_cap):
    """Size the batch tile from the VMEM budget (double-buffered x/out tiles
    + single-buffered resident weights), then make sure v7x's two TensorCores
    both get a tile when the batch allows."""
    budget = vmem_cap // 2  # leave headroom for compiler-internal scratch
    per_row = 2 * input_dim * 4 + 2 * e_pad * out_itemsize
    avail = budget - resident_bytes - (2 << 20)
    tb = (avail // per_row) if avail > 0 else 8
    tb = max(8, min(2048, (tb // 8) * 8))
    if tb >= batch:
        if batch >= 16:
            # >= 2 grid steps so a 2-TC chip (v7x) can split the batch.
            tb = max(8, _round_up(_cdiv(batch, 2), 8))
        else:
            tb = batch
    return tb


def gating_forward(x, prepared, num_experts, *, block_rows=None,
                   out_dtype=jnp.float32, return_padded=False):
    """GatingNetwork forward pass with a Pallas TPU kernel.

    Args:
      x: [batch, input_dim] f32 (or bf16) features.
      prepared: output of prepare_params().
      num_experts: number of (real) experts.
      block_rows: optional batch tile size override (multiple of 8).
      out_dtype: output dtype (bf16 halves the output HBM write).
      return_padded: return the lane-dense [batch, 128k] slab (padded experts
        have exactly 0 weight) and skip the post-kernel slice pass.

    Returns:
      [batch, num_experts] (or padded) softmax expert weights.
    """
    w_list, packed_bias, widths, inv_t = prepared
    batch, input_dim = x.shape
    n_layers = len(w_list)
    e_pad = widths[-1]
    out_itemsize = jnp.dtype(out_dtype).itemsize

    resident_bytes = (sum(int(w.size) * 2 for w in w_list)
                      + int(packed_bias.size) * 4)
    vmem_cap = _vmem_capacity_bytes()

    if block_rows is None:
        tb = _pick_block_rows(batch, input_dim, e_pad, resident_bytes,
                              out_itemsize, vmem_cap)
    elif block_rows >= batch:
        tb = batch
    else:
        tb = max(8, (block_rows // 8) * 8)
    grid = (_cdiv(batch, tb),)

    kernel = functools.partial(_gating_kernel, n_layers, widths, inv_t)

    def _make_call(single_buffer):
        def resident_spec(shape):
            # Constant index_map -> stays VMEM-resident across grid steps;
            # Buffered(1) avoids a useless double buffer for these operands.
            if single_buffer:
                return pl.BlockSpec(shape, lambda i: (0, 0),
                                    pipeline_mode=pl.Buffered(1))
            return pl.BlockSpec(shape, lambda i: (0, 0))

        in_specs = [pl.BlockSpec((tb, input_dim), lambda i: (i, 0))]
        in_specs += [resident_spec(w.shape) for w in w_list]
        in_specs.append(resident_spec(packed_bias.shape))
        out_specs = pl.BlockSpec((tb, e_pad), lambda i: (i, 0))

        resident_factor = 1 if single_buffer else 2
        need = (resident_factor * resident_bytes
                + 2 * tb * input_dim * 4          # double-buffered x tiles (f32)
                + 2 * tb * e_pad * out_itemsize   # double-buffered out tiles
                + (4 << 20))                      # compiler scratch headroom
        vmem_limit = int(min(vmem_cap, max(need, 32 << 20)))

        flops = 2 * batch * sum(int(w.shape[0]) * int(w.shape[1])
                                for w in w_list)
        bytes_accessed = (int(x.size) * int(x.dtype.itemsize)
                          + resident_bytes + batch * e_pad * out_itemsize)
        cost = pl.CostEstimate(flops=flops,
                               transcendentals=batch * e_pad,
                               bytes_accessed=bytes_accessed)

        return pl.pallas_call(
            kernel,
            out_shape=jax.ShapeDtypeStruct((batch, e_pad), out_dtype),
            grid=grid,
            in_specs=in_specs,
            out_specs=out_specs,
            compiler_params=pltpu.CompilerParams(
                # TODO(synk): on v7x pltpu.CORE_PARALLEL may shard the batch
                # grid across the 2 TensorCores more explicitly; "parallel" is
                # used here because it is valid on all generations.
                dimension_semantics=("parallel",),
                vmem_limit_bytes=vmem_limit,
            ),
            cost_estimate=cost,
        )

    try:
        out_padded = _make_call(single_buffer=True)(x, *w_list, packed_bias)
    except Exception:
        # Fallback for jax versions without pipeline_mode=pl.Buffered(1).
        out_padded = _make_call(single_buffer=False)(x, *w_list, packed_bias)

    if return_padded:
        # Padded experts have exactly 0 weight; downstream top-k/argmax is
        # unaffected and skipping the slice saves an extra HBM pass.
        return out_padded
    return out_padded[:, :num_experts]


def init_gating_params(key, input_dim, hidden_dims, num_experts):
    """Deterministic synthetic parameters (same shapes as the PyTorch module)."""
    dims = [input_dim] + list(hidden_dims) + [num_experts]
    params = []
    for i in range(len(dims) - 1):
        key, kw, kb = jax.random.split(key, 3)
        bound = 1.0 / jnp.sqrt(dims[i])
        w = jax.random.uniform(kw, (dims[i], dims[i + 1]), jnp.float32, -bound, bound)
        b = jax.random.uniform(kb, (1, dims[i + 1]), jnp.float32, -bound, bound)
        params.append((w, b))
    return params


def gating_forward_ref(x, params, temperature=1.0):
    """Plain-JAX f32 reference for validation (matches the PyTorch forward)."""
    h = x
    for i, (w, b) in enumerate(params):
        h = h @ w + b
        if i < len(params) - 1:
            h = jnp.maximum(h, 0.0)
    return jax.nn.softmax(h / temperature, axis=-1)


if __name__ == "__main__":
    # Shapes consistent with the module: x is [batch_size, input_dim].
    batch = 8
    input_dim = 32
    hidden_dims = [64, 32]
    num_experts = 3
    temperature = 0.7  # != 1 so the folded-temperature path is exercised

    key = jax.random.PRNGKey(0)
    key, kx, kx2 = jax.random.split(key, 3)
    x = jax.random.normal(kx, (batch, input_dim), dtype=jnp.float32)
    params = init_gating_params(key, input_dim, hidden_dims, num_experts)

    prepared = prepare_params(params, temperature)
    weights = jax.block_until_ready(gating_forward(x, prepared, num_experts))

    ref = gating_forward_ref(x, params, temperature)
    assert weights.shape == (batch, num_experts)
    # bf16 matmul operands + approx reciprocal -> looser tolerance than pure f32.
    assert jnp.allclose(weights, ref, atol=2e-2, rtol=2e-2), "mismatch vs reference"
    # softmax rows sum to ~1 (approx reciprocal -> ~1e-4 relative error)
    assert jnp.allclose(jnp.sum(weights, axis=-1), 1.0, atol=5e-3)

    # Pipelined-grid + partial-tile path: batch not divisible by the tile.
    batch2 = 20
    x2 = jax.random.normal(kx2, (batch2, input_dim), dtype=jnp.float32)
    weights2 = jax.block_until_ready(
        gating_forward(x2, prepared, num_experts, block_rows=8))
    ref2 = gating_forward_ref(x2, params, temperature)
    assert weights2.shape == (batch2, num_experts)
    assert jnp.allclose(weights2, ref2, atol=2e-2, rtol=2e-2), "partial-tile mismatch"

    print("KERNEL_OK")
</pallas_src>

<mosaic_0001>
module attributes {stable_mosaic.version = 11 : i64} {
  func.func @_gating_kernel(%arg0: i32, %arg1: memref<8x32xf32, #tpu.memory_space<vmem>>, %arg2: memref<32x128xbf16, #tpu.memory_space<vmem>>, %arg3: memref<128x128xbf16, #tpu.memory_space<vmem>>, %arg4: memref<128x128xbf16, #tpu.memory_space<vmem>>, %arg5: memref<1x384xf32, #tpu.memory_space<vmem>>, %arg6: memref<8x128xf32, #tpu.memory_space<vmem>>) attributes {dimension_semantics = [#tpu.dimension_semantics<parallel>], iteration_bounds = array<i64: 1>, scalar_prefetch = 0 : i64, scratch_operands = 0 : i64, tpu.core_type = #tpu.core_type<tc>, window_params = [{transform_indices = @transform_0, window_bounds = array<i64: 8, 32>}, {pipeline_mode = #tpu.pipeline_mode<synchronous>, transform_indices = @transform_1, window_bounds = array<i64: 32, 128>}, {pipeline_mode = #tpu.pipeline_mode<synchronous>, transform_indices = @transform_2, window_bounds = array<i64: 128, 128>}, {pipeline_mode = #tpu.pipeline_mode<synchronous>, transform_indices = @transform_3, window_bounds = array<i64: 128, 128>}, {pipeline_mode = #tpu.pipeline_mode<synchronous>, transform_indices = @transform_4, window_bounds = array<i64: 1, 384>}, {transform_indices = @transform_5, window_bounds = array<i64: 8, 128>}]} {
    %c0 = arith.constant 0 : index
    %c0_0 = arith.constant 0 : index
    %0 = vector.load %arg1[%c0, %c0_0] : memref<8x32xf32, #tpu.memory_space<vmem>>, vector<8x32xf32>
    %1 = arith.truncf %0 : vector<8x32xf32> to vector<8x32xbf16>
    %c0_1 = arith.constant 0 : index
    %c0_2 = arith.constant 0 : index
    %2 = vector.load %arg2[%c0_1, %c0_2] : memref<32x128xbf16, #tpu.memory_space<vmem>>, vector<32x128xbf16>
    %cst = arith.constant dense<0.000000e+00> : vector<8x128xf32>
    %3 = tpu.matmul %1, %2, %cst {dimension_numbers = #tpu.dot_dimension_numbers<[1], [0], [0], [1], [0, 0, 1, 1], [], []>} : vector<8x32xbf16>, vector<32x128xbf16>, vector<8x128xf32> -> vector<8x128xf32>
    %c0_3 = arith.constant 0 : index
    %c0_4 = arith.constant 0 : index
    %4 = vector.load %arg5[%c0_3, %c0_4] : memref<1x384xf32, #tpu.memory_space<vmem>>, vector<1x128xf32>
    %5 = vector.broadcast %4 : vector<1x128xf32> to vector<8x128xf32>
    %6 = arith.addf %3, %5 : vector<8x128xf32>
    %cst_5 = arith.constant 0.000000e+00 : f32
    %7 = vector.broadcast %cst_5 : f32 to vector<8x128xf32>
    %8 = arith.maximumf %6, %7 : vector<8x128xf32>
    %9 = arith.truncf %8 : vector<8x128xf32> to vector<8x128xbf16>
    %c0_6 = arith.constant 0 : index
    %c0_7 = arith.constant 0 : index
    %10 = vector.load %arg3[%c0_6, %c0_7] : memref<128x128xbf16, #tpu.memory_space<vmem>>, vector<128x128xbf16>
    %cst_8 = arith.constant dense<0.000000e+00> : vector<8x128xf32>
    %11 = tpu.matmul %9, %10, %cst_8 {dimension_numbers = #tpu.dot_dimension_numbers<[1], [0], [0], [1], [0, 0, 1, 1], [], []>} : vector<8x128xbf16>, vector<128x128xbf16>, vector<8x128xf32> -> vector<8x128xf32>
    %c0_9 = arith.constant 0 : index
    %c128 = arith.constant 128 : index
    %12 = vector.load %arg5[%c0_9, %c128] : memref<1x384xf32, #tpu.memory_space<vmem>>, vector<1x128xf32>
    %13 = vector.broadcast %12 : vector<1x128xf32> to vector<8x128xf32>
    %14 = arith.addf %11, %13 : vector<8x128xf32>
    %cst_10 = arith.constant 0.000000e+00 : f32
    %15 = vector.broadcast %cst_10 : f32 to vector<8x128xf32>
    %16 = arith.maximumf %14, %15 : vector<8x128xf32>
    %17 = arith.truncf %16 : vector<8x128xf32> to vector<8x128xbf16>
    %c0_11 = arith.constant 0 : index
    %c0_12 = arith.constant 0 : index
    %18 = vector.load %arg4[%c0_11, %c0_12] : memref<128x128xbf16, #tpu.memory_space<vmem>>, vector<128x128xbf16>
    %cst_13 = arith.constant dense<0.000000e+00> : vector<8x128xf32>
    %19 = tpu.matmul %17, %18, %cst_13 {dimension_numbers = #tpu.dot_dimension_numbers<[1], [0], [0], [1], [0, 0, 1, 1], [], []>} : vector<8x128xbf16>, vector<128x128xbf16>, vector<8x128xf32> -> vector<8x128xf32>
    %cst_14 = arith.constant 1.42857146 : f32
    %20 = vector.broadcast %cst_14 : f32 to vector<8x128xf32>
    %21 = arith.mulf %19, %20 : vector<8x128xf32>
    %c0_15 = arith.constant 0 : index
    %c256 = arith.constant 256 : index
    %22 = vector.load %arg5[%c0_15, %c256] : memref<1x384xf32, #tpu.memory_space<vmem>>, vector<1x128xf32>
    %23 = vector.broadcast %22 : vector<1x128xf32> to vector<8x128xf32>
    %24 = arith.addf %21, %23 : vector<8x128xf32>
    %cst_16 = arith.constant dense<0xFF800000> : vector<8xf32>
    %25 = vector.multi_reduction <maximumf>, %24, %cst_16 [1] : vector<8x128xf32> to vector<8xf32>
    %26 = vector.shape_cast %25 : vector<8xf32> to vector<8x1xf32>
    %27 = vector.broadcast %26 : vector<8x1xf32> to vector<8x128xf32>
    %28 = arith.subf %24, %27 : vector<8x128xf32>
    %29 = math.exp %28 : vector<8x128xf32>
    %cst_17 = arith.constant dense<0.000000e+00> : vector<8xf32>
    %30 = vector.multi_reduction <add>, %29, %cst_17 [1] : vector<8x128xf32> to vector<8xf32>
    %31 = vector.shape_cast %30 : vector<8xf32> to vector<8x1xf32>
    %32 = tpu.reciprocal %31 {approx = true} : vector<8x1xf32> -> vector<8x1xf32>
    %33 = vector.broadcast %32 : vector<8x1xf32> to vector<8x128xf32>
    %34 = arith.mulf %29, %33 : vector<8x128xf32>
    %c0_18 = arith.constant 0 : index
    %c0_19 = arith.constant 0 : index
    %35 = vector.load %arg6[%c0_18, %c0_19] : memref<8x128xf32, #tpu.memory_space<vmem>>, vector<8x128xf32>
    tpu.vector_store %arg6[%c0_18, %c0_19], %34 {strides = array<i32>} : memref<8x128xf32, #tpu.memory_space<vmem>>, vector<8x128xf32>,
    return
  }
  func.func @transform_0(%arg0: i32) -> (i32, i32) {
    %c0_i32 = arith.constant 0 : i32
    %c0_i32_0 = arith.constant 0 : i32
    return %arg0, %c0_i32 : i32, i32
  }
  func.func @transform_1(%arg0: i32) -> (i32, i32) {
    %c0_i32 = arith.constant 0 : i32
    %c0_i32_0 = arith.constant 0 : i32
    %c0_i32_1 = arith.constant 0 : i32
    return %c0_i32, %c0_i32_0 : i32, i32
  }
  func.func @transform_2(%arg0: i32) -> (i32, i32) {
    %c0_i32 = arith.constant 0 : i32
    %c0_i32_0 = arith.constant 0 : i32
    %c0_i32_1 = arith.constant 0 : i32
    return %c0_i32, %c0_i32_0 : i32, i32
  }
  func.func @transform_3(%arg0: i32) -> (i32, i32) {
    %c0_i32 = arith.constant 0 : i32
    %c0_i32_0 = arith.constant 0 : i32
    %c0_i32_1 = arith.constant 0 : i32
    return %c0_i32, %c0_i32_0 : i32, i32
  }
  func.func @transform_4(%arg0: i32) -> (i32, i32) {
    %c0_i32 = arith.constant 0 : i32
    %c0_i32_0 = arith.constant 0 : i32
    %c0_i32_1 = arith.constant 0 : i32
    return %c0_i32, %c0_i32_0 : i32, i32
  }
  func.func @transform_5(%arg0: i32) -> (i32, i32) {
    %c0_i32 = arith.constant 0 : i32
    %c0_i32_0 = arith.constant 0 : i32
    return %arg0, %c0_i32 : i32, i32
  }
}

module attributes {stable_mosaic.version = 11 : i64} {
  func.func @_gating_kernel(%arg0: i32, %arg1: memref<8x32xf32, #tpu.memory_space<vmem>>, %arg2: memref<32x128xbf16, #tpu.memory_space<vmem>>, %arg3: memref<128x128xbf16, #tpu.memory_space<vmem>>, %arg4: memref<128x128xbf16, #tpu.memory_space<vmem>>, %arg5: memref<1x384xf32, #tpu.memory_space<vmem>>, %arg6: memref<8x128xf32, #tpu.memory_space<vmem>>) attributes {dimension_semantics = [#tpu.dimension_semantics<parallel>], iteration_bounds = array<i64: 1>, scalar_prefetch = 0 : i64, scratch_operands = 0 : i64, tpu.core_type = #tpu.core_type<tc>, window_params = [{transform_indices = @transform_0, window_bounds = array<i64: 8, 32>}, {pipeline_mode = #tpu.pipeline_mode<synchronous>, transform_indices = @transform_1, window_bounds = array<i64: 32, 128>}, {pipeline_mode = #tpu.pipeline_mode<synchronous>, transform_indices = @transform_2, window_bounds = array<i64: 128, 128>}, {pipeline_mode = #tpu.pipeline_mode<synchronous>, transform_indices = @transform_3, window_bounds = array<i64: 128, 128>}, {pipeline_mode = #tpu.pipeline_mode<synchronous>, transform_indices = @transform_4, window_bounds = array<i64: 1, 384>}, {transform_indices = @transform_5, window_bounds = array<i64: 8, 128>}]} {
    %c0 = arith.constant 0 : index
    %c0_0 = arith.constant 0 : index
    %0 = vector.load %arg1[%c0, %c0_0] : memref<8x32xf32, #tpu.memory_space<vmem>>, vector<8x32xf32>
    %1 = arith.truncf %0 : vector<8x32xf32> to vector<8x32xbf16>
    %c0_1 = arith.constant 0 : index
    %c0_2 = arith.constant 0 : index
    %2 = vector.load %arg2[%c0_1, %c0_2] : memref<32x128xbf16, #tpu.memory_space<vmem>>, vector<32x128xbf16>
    %cst = arith.constant dense<0.000000e+00> : vector<8x128xf32>
    %3 = tpu.matmul %1, %2, %cst {dimension_numbers = #tpu.dot_dimension_numbers<[1], [0], [0], [1], [0, 0, 1, 1], [], []>} : vector<8x32xbf16>, vector<32x128xbf16>, vector<8x128xf32> -> vector<8x128xf32>
    %c0_3 = arith.constant 0 : index
    %c0_4 = arith.constant 0 : index
    %4 = vector.load %arg5[%c0_3, %c0_4] : memref<1x384xf32, #tpu.memory_space<vmem>>, vector<1x128xf32>
    %5 = vector.broadcast %4 : vector<1x128xf32> to vector<8x128xf32>
    %6 = arith.addf %3, %5 : vector<8x128xf32>
    %cst_5 = arith.constant 0.000000e+00 : f32
    %7 = vector.broadcast %cst_5 : f32 to vector<8x128xf32>
    %8 = arith.maximumf %6, %7 : vector<8x128xf32>
    %9 = arith.truncf %8 : vector<8x128xf32> to vector<8x128xbf16>
    %c0_6 = arith.constant 0 : index
    %c0_7 = arith.constant 0 : index
    %10 = vector.load %arg3[%c0_6, %c0_7] : memref<128x128xbf16, #tpu.memory_space<vmem>>, vector<128x128xbf16>
    %cst_8 = arith.constant dense<0.000000e+00> : vector<8x128xf32>
    %11 = tpu.matmul %9, %10, %cst_8 {dimension_numbers = #tpu.dot_dimension_numbers<[1], [0], [0], [1], [0, 0, 1, 1], [], []>} : vector<8x128xbf16>, vector<128x128xbf16>, vector<8x128xf32> -> vector<8x128xf32>
    %c0_9 = arith.constant 0 : index
    %c128 = arith.constant 128 : index
    %12 = vector.load %arg5[%c0_9, %c128] : memref<1x384xf32, #tpu.memory_space<vmem>>, vector<1x128xf32>
    %13 = vector.broadcast %12 : vector<1x128xf32> to vector<8x128xf32>
    %14 = arith.addf %11, %13 : vector<8x128xf32>
    %cst_10 = arith.constant 0.000000e+00 : f32
    %15 = vector.broadcast %cst_10 : f32 to vector<8x128xf32>
    %16 = arith.maximumf %14, %15 : vector<8x128xf32>
    %17 = arith.truncf %16 : vector<8x128xf32> to vector<8x128xbf16>
    %c0_11 = arith.constant 0 : index
    %c0_12 = arith.constant 0 : index
    %18 = vector.load %arg4[%c0_11, %c0_12] : memref<128x128xbf16, #tpu.memory_space<vmem>>, vector<128x128xbf16>
    %cst_13 = arith.constant dense<0.000000e+00> : vector<8x128xf32>
    %19 = tpu.matmul %17, %18, %cst_13 {dimension_numbers = #tpu.dot_dimension_numbers<[1], [0], [0], [1], [0, 0, 1, 1], [], []>} : vector<8x128xbf16>, vector<128x128xbf16>, vector<8x128xf32> -> vector<8x128xf32>
    %cst_14 = arith.constant 1.42857146 : f32
    %20 = vector.broadcast %cst_14 : f32 to vector<8x128xf32>
    %21 = arith.mulf %19, %20 : vector<8x128xf32>
    %c0_15 = arith.constant 0 : index
    %c256 = arith.constant 256 : index
    %22 = vector.load %arg5[%c0_15, %c256] : memref<1x384xf32, #tpu.memory_space<vmem>>, vector<1x128xf32>
    %23 = vector.broadcast %22 : vector<1x128xf32> to vector<8x128xf32>
    %24 = arith.addf %21, %23 : vector<8x128xf32>
    %cst_16 = arith.constant dense<0xFF800000> : vector<8xf32>
    %25 = vector.multi_reduction <maximumf>, %24, %cst_16 [1] : vector<8x128xf32> to vector<8xf32>
    %26 = vector.shape_cast %25 : vector<8xf32> to vector<8x1xf32>
    %27 = vector.broadcast %26 : vector<8x1xf32> to vector<8x128xf32>
    %28 = arith.subf %24, %27 : vector<8x128xf32>
    %29 = math.exp %28 : vector<8x128xf32>
    %cst_17 = arith.constant dense<0.000000e+00> : vector<8xf32>
    %30 = vector.multi_reduction <add>, %29, %cst_17 [1] : vector<8x128xf32> to vector<8xf32>
    %31 = vector.shape_cast %30 : vector<8xf32> to vector<8x1xf32>
    %32 = tpu.reciprocal %31 {approx = true} : vector<8x1xf32> -> vector<8x1xf32>
    %33 = vector.broadcast %32 : vector<8x1xf32> to vector<8x128xf32>
    %34 = arith.mulf %29, %33 : vector<8x128xf32>
    %c0_18 = arith.constant 0 : index
    %c0_19 = arith.constant 0 : index
    %35 = vector.load %arg6[%c0_18, %c0_19] : memref<8x128xf32, #tpu.memory_space<vmem>>, vector<8x128xf32>
    tpu.vector_store %arg6[%c0_18, %c0_19], %34 {strides = array<i32>} : memref<8x128xf32, #tpu.memory_space<vmem>>, vector<8x128xf32>,
    return
  }
  func.func @transform_0(%arg0: i32) -> (i32, i32) {
    %c0_i32 = arith.constant 0 : i32
    %c0_i32_0 = arith.constant 0 : i32
    return %arg0, %c0_i32 : i32, i32
  }
  func.func @transform_1(%arg0: i32) -> (i32, i32) {
    %c0_i32 = arith.constant 0 : i32
    %c0_i32_0 = arith.constant 0 : i32
    %c0_i32_1 = arith.constant 0 : i32
    return %c0_i32, %c0_i32_0 : i32, i32
  }
  func.func @transform_2(%arg0: i32) -> (i32, i32) {
    %c0_i32 = arith.constant 0 : i32
    %c0_i32_0 = arith.constant 0 : i32
    %c0_i32_1 = arith.constant 0 : i32
    return %c0_i32, %c0_i32_0 : i32, i32
  }
  func.func @transform_3(%arg0: i32) -> (i32, i32) {
    %c0_i32 = arith.constant 0 : i32
    %c0_i32_0 = arith.constant 0 : i32
    %c0_i32_1 = arith.constant 0 : i32
    return %c0_i32, %c0_i32_0 : i32, i32
  }
  func.func @transform_4(%arg0: i32) -> (i32, i32) {
    %c0_i32 = arith.constant 0 : i32
    %c0_i32_0 = arith.constant 0 : i32
    %c0_i32_1 = arith.constant 0 : i32
    return %c0_i32, %c0_i32_0 : i32, i32
  }
  func.func @transform_5(%arg0: i32) -> (i32, i32) {
    %c0_i32 = arith.constant 0 : i32
    %c0_i32_0 = arith.constant 0 : i32
    return %arg0, %c0_i32 : i32, i32
  }
}

</mosaic_0001>

<bundles_post_ra>
// kernel: tpu_custom_call.1
= control target key start
LH: loop header
LB: loop body
LE: loop exit
PB: predicated region body
PF: predicated region fallthrough
CT: control target
= control target key end

     0   :  { %10 = vsyncpa [#allocation3], 0  ;;  %s613_s0 = inlined_call_operand.hbm [shape: f32[8,32], index: 0, kind: input, shape index: {}]   ;;  %s614_s1 = inlined_call_operand.hbm [shape: bf16[32,128], index: 1, kind: input, shape index: {}]   ;;  %s615_s2 = inlined_call_operand.hbm [shape: bf16[128,128], index: 2, kind: input, shape index: {}]   ;;  %s616_s3 = inlined_call_operand.hbm [shape: bf16[128,128], index: 3, kind: input, shape index: {}]   ;;  %s617_s4 = inlined_call_operand.vmem [shape: f32[1,384], index: 4, kind: input, shape index: {}]   ;;  %s618_s5 = inlined_call_operand.hbm [shape: f32[8,128], index: 5, kind: output, shape index: {}]  }
   0x1   :  { %11 = vsyncpa [#allocation6], 0 }
   0x2   :  { %12 = vsyncpa [#allocation9], 0  ;;  %s29_s20 = sshll.u32 %s614_s1, 4  ;;  %s30_s20 = int_to_ptr.hbm [resolvable:$true] %s29_s20 }
   0x3   :  { %13 = vsyncpa [#allocation4], 0  ;;  %s552_s21 = smov [#allocation5]   ;;  %s19_s25 = sshll.u32 %s613_s0, 4  ;;  %s20_s25 = int_to_ptr.hbm [resolvable:$true] %s19_s25 }
   0x4   :  { %s31_s22 = sshll.u32 %s552_s21, 4  ;;  %s553_s26 = smov 64   ;;  %s32_s22 = int_to_ptr.vmem [resolvable:$true] %s31_s22 }
   0x5   :  { %s554_s27 = smov 4   ;;  %s555_s28 = smov [#allocation2]  }
   0x6   :  { %37 = dma.hbm_to_vmem [thread:$0]  %s30_s20, 256, %s32_s22, [#allocation6], %s553_s26, %s553_s26, %s554_s27  }
   0x7   :  { %s21_s29 = sshll.u32 %s555_s28, 4  ;;  %s42_s7 = sshll.u32 %s615_s2, 4  ;;  %s22_s29 = int_to_ptr.vmem [resolvable:$true] %s21_s29  ;;  %s43_s7 = int_to_ptr.hbm [resolvable:$true] %s42_s7 }
   0x8   :  { %24 = dma.hbm_to_vmem [thread:$0]  %s20_s25, 128, %s22_s29, [#allocation3]  }
   0x9   :  { %s55_s9 = sshll.u32 %s616_s3, 4  ;;  %s556_s10 = smov [#allocation7]   ;;  %s56_s9 = int_to_ptr.hbm [resolvable:$true] %s55_s9 }
   0xa   :  { %s44_s11 = sshll.u32 %s556_s10, 4  ;;  %s557_s0 = smov [#allocation8]   ;;  %s45_s11 = int_to_ptr.vmem [resolvable:$true] %s44_s11 }
   0xb   :  { %50 = dma.hbm_to_vmem [thread:$0]  %s43_s7, 1024, %s45_s11, [#allocation6], %s553_s26, %s553_s26, %s554_s27  }
   0xc   :  { %s57_s12 = sshll.u32 %s557_s0, 4  ;;  %s58_s12 = int_to_ptr.vmem [resolvable:$true] %s57_s12 }
   0xd   :  { %63 = dma.hbm_to_vmem [thread:$0]  %s56_s9, 1024, %s58_s12, [#allocation9], %s553_s26, %s553_s26, %s554_s27  }
   0xe   :  { %544 = dma.done.wait [#allocation3], 128  }
   0xf   :  { %545 = vsyncadd [#allocation3], 4294967168 }
  0x10   :  { %546 = dma.done.wait [#allocation6], 1280  }
  0x11   :  { %547 = vsyncadd [#allocation6], 4294966016 }
  0x12   :  { %548 = dma.done.wait [#allocation9], 1024  }
  0x13   :  { %549 = vsyncadd [#allocation9], 4294966272  ;;  %v393_v0 = vld [vmem:[#allocation5 + $0x8] sm:$0xff]  ;;  %v392_v2 = vld [vmem:[#allocation5] sm:$0xff]  ;;  %vm105_vm0 = vcmask 261120   ;;  %s558_s17 = smov [#allocation10]  }
  0x14   :  { %v401_v1 = vld [vmem:[#allocation7 + $0x38] sm:$0xff]  ;;  %115 = vmatpush.bf16.msra.mxu0 %v393_v0  ;;  %v83_v3 = vld [vmem:[#allocation2] sm:$0xff]  ;;  %v400_v4 = vld [vmem:[#allocation7 + $0x30] sm:$0xff]  ;;  %s305_s18 = sshll.u32 %s558_s17, 4  ;;  %s307_s21 = sshll.u32 %s618_s5, 4  ;;  %s306_s18 = int_to_ptr.vmem [resolvable:$true] %s305_s18  ;;  %s308_s21 = int_to_ptr.hbm [resolvable:$true] %s307_s21 }
  0x15   :  { %192 = vmatpush.bf16.msra.mxu1 %v401_v1  ;;  %v84_v5 = vpack.c.bf16 %v83_v3, %v83_v3  ;;  %v399_v6 = vld [vmem:[#allocation7 + $0x28] sm:$0xff]  ;;  %v398_v7 = vld [vmem:[#allocation7 + $0x20] sm:$0xff]  ;;  %v397_v8 = vld [vmem:[#allocation7 + $0x18] sm:$0xff] }
  0x16   :  { %v396_v9 = vld [vmem:[#allocation7 + $0x10] sm:$0xff]  ;;  %v395_v10 = vld [vmem:[#allocation7 + $0x8] sm:$0xff]  ;;  %v394_v11 = vld [vmem:[#allocation7] sm:$0xff] }
  0x17   :  { %v409_v12 = vld [vmem:[#allocation8 + $0x38] sm:$0xff]  ;;  %v408_v13 = vld [vmem:[#allocation8 + $0x30] sm:$0xff]  ;;  %v407_v14 = vld [vmem:[#allocation8 + $0x28] sm:$0xff] }
  0x18   :  { %116 = vmatpush.bf16.msra.mxu0 %v392_v2  ;;  %271 = vmatpush.bf16.msra.mxu2 %v409_v12  ;;  %v406_v15 = vld [vmem:[#allocation8 + $0x20] sm:$0xff]  ;;  %v405_v16 = vld [vmem:[#allocation8 + $0x18] sm:$0xff]  ;;  %v404_v17 = vld [vmem:[#allocation8 + $0x10] sm:$0xff] }
  0x19   :  { %193 = vmatpush.bf16.msra.mxu1 %v400_v4  ;;  %v417_v18 = vld [vmem:[%s617_s4] ss:$0 sm:$0xff]  ;;  %v402_v25 = vld [vmem:[#allocation8] sm:$0xff]  ;;  %v418_v26 = vld [vmem:[%s617_s4 + $0x1] ss:$0 sm:$0xff] }
  0x1a   :  { %v403_v24 = vld [vmem:[#allocation8 + $0x8] sm:$0xff] }
  0x1b   :  { %327 = vmatmul.msk.bf16.vlgmr.msra.gmra.mxu0 %vm105_vm0, %v84_v5  ;;  %v419_v32 = vld [vmem:[%s617_s4 + $0x2] ss:$0 sm:$0xff] }
  0x1c   :  { %272 = vmatpush.bf16.msra.mxu2 %v408_v13 }
  0x1d   :  { %194 = vmatpush.bf16.msra.mxu1 %v399_v6 }
  0x20   :  { %273 = vmatpush.bf16.msra.mxu2 %v407_v14 }
  0x21   :  { %195 = vmatpush.bf16.msra.mxu1 %v398_v7 }
  0x24   :  { %274 = vmatpush.bf16.msra.mxu2 %v406_v15 }
  0x25   :  { %196 = vmatpush.bf16.msra.mxu1 %v397_v8 }
  0x28   :  { %275 = vmatpush.bf16.msra.mxu2 %v405_v16 }
  0x29   :  { %197 = vmatpush.bf16.msra.mxu1 %v396_v9 }
  0x2c   :  { %276 = vmatpush.bf16.msra.mxu2 %v404_v17 }
  0x2d   :  { %198 = vmatpush.bf16.msra.mxu1 %v395_v10 }
  0x30   :  { %277 = vmatpush.bf16.msra.mxu2 %v403_v24 }
  0x31   :  { %199 = vmatpush.bf16.msra.mxu1 %v394_v11 }
  0x34   :  { %278 = vmatpush.bf16.msra.mxu2 %v402_v25 }
  0x98   :  { %v118_v19 = vpop.f32.mrf.mxu0 }
  0x99   :  { %v119_v20 = vadd.f32 %v417_v18, %v118_v19 }
  0x9b   :  { %v122_v21 = vmax.f32 %v119_v20, 0.0 }
  0x9d   :  { %v123_v22 = vpack.c.bf16 %v122_v21, %v122_v21 }
  0x9f   :  { %200 = vmatmul.bf16.vlgmr.msra.gmra.mxu1 %v123_v22 }
  0xa0   :  { %v120_v23 = vpop.f32.mrf.mxu0 }
 0x11c   :  { %v201_v27 = vpop.f32.mrf.mxu1 }
 0x11d   :  { %v202_v28 = vadd.f32 %v418_v26, %v201_v27 }
 0x11f   :  { %v205_v29 = vmax.f32 %v202_v28, 0.0 }
 0x121   :  { %v206_v30 = vpack.c.bf16 %v205_v29, %v205_v29 }
 0x123   :  { %279 = vmatmul.bf16.vlgmr.msra.gmra.mxu2 %v206_v30 }
 0x124   :  { %v203_v31 = vpop.f32.mrf.mxu1 }
 0x1a6   :  { %v280_v33 = vpop.f32.mrf.mxu2 }
 0x1a7   :  { %v284_v34 = vmul.f32 1.4285715, %v280_v33 }
 0x1a9   :  { %v289_v35 = vadd.f32 %v419_v32, %v284_v34 }
 0x1ab   :  { %290 = vmax.xlane.f32.xlu0 %v289_v35 }
 0x1ae   :  { %v282_v36 = vpop.f32.mrf.mxu2 }
 0x21e   :  { %v291_v37 = vpop.xlane.xlu0 %290 }
 0x21f   :  { %v292_v38 = vsub.f32 %v289_v35, %v291_v37 }
 0x221   :  { %v293_v39 = vmul.f32 1.442695, %v292_v38 }
 0x223   :  { %420 = vpow2.f32 %v293_v39 }
 0x229   :  { %v421_v40 = vpop.eup %420 }
 0x22a   :  { %295 = vadd.xlane.f32.xlu0 %v421_v40 }
 0x29d   :  { %v296_v41 = vpop.xlane.xlu0 %295 }
 0x29e   :  { %422 = vrcp.f32 %v296_v41 }
 0x2a4   :  { %v423_v42 = vpop.eup %422 }
 0x2a5   :  { %v298_v43 = vmul.f32 %v423_v42, %v421_v40 }
 0x2a7   :  { %299 = vst [vmem:[#allocation10] sm:$0xff] %v298_v43 }
 0x2a8   :  { %310 = dma.vmem_to_hbm [thread:$0]  %s306_s18, 128, %s308_s21, [#allocation4]  }
 0x2a9   :  { %550 = dma.done.wait [#allocation4], 128  }
 0x2aa   :  { %551 = vsyncadd [#allocation4], 4294967168 }
 0x2ab   :  { %315 = vsyncpa [#allocation3], 1 }
 0x2ac   :  { %316 = vsyncpa [#allocation6], 1 }
 0x2ad   :  { %317 = vsyncpa [#allocation9], 1 }
 0x2ae   :  { %318 = vsyncpa [#allocation4], 1 }

// kernel: tpu_custom_call.1
= control target key start
LH: loop header
LB: loop body
LE: loop exit
PB: predicated region body
PF: predicated region fallthrough
CT: control target
= control target key end

     0   :  { %10 = vsyncpa [#allocation3], 0  ;;  %s613_s0 = inlined_call_operand.hbm [shape: f32[8,32], index: 0, kind: input, shape index: {}]   ;;  %s614_s1 = inlined_call_operand.hbm [shape: bf16[32,128], index: 1, kind: input, shape index: {}]   ;;  %s615_s2 = inlined_call_operand.hbm [shape: bf16[128,128], index: 2, kind: input, shape index: {}]   ;;  %s616_s3 = inlined_call_operand.hbm [shape: bf16[128,128], index: 3, kind: input, shape index: {}]   ;;  %s617_s4 = inlined_call_operand.vmem [shape: f32[1,384], index: 4, kind: input, shape index: {}]   ;;  %s618_s5 = inlined_call_operand.hbm [shape: f32[8,128], index: 5, kind: output, shape index: {}]  }
   0x1   :  { %11 = vsyncpa [#allocation6], 0 }
   0x2   :  { %12 = vsyncpa [#allocation9], 0  ;;  %s29_s20 = sshll.u32 %s614_s1, 4  ;;  %s30_s20 = int_to_ptr.hbm [resolvable:$true] %s29_s20 }
   0x3   :  { %13 = vsyncpa [#allocation4], 0  ;;  %s552_s21 = smov [#allocation5]   ;;  %s19_s25 = sshll.u32 %s613_s0, 4  ;;  %s20_s25 = int_to_ptr.hbm [resolvable:$true] %s19_s25 }
   0x4   :  { %s31_s22 = sshll.u32 %s552_s21, 4  ;;  %s553_s26 = smov 64   ;;  %s32_s22 = int_to_ptr.vmem [resolvable:$true] %s31_s22 }
   0x5   :  { %s554_s27 = smov 4   ;;  %s555_s28 = smov [#allocation2]  }
   0x6   :  { %37 = dma.hbm_to_vmem [thread:$0]  %s30_s20, 256, %s32_s22, [#allocation6], %s553_s26, %s553_s26, %s554_s27  }
   0x7   :  { %s21_s29 = sshll.u32 %s555_s28, 4  ;;  %s42_s7 = sshll.u32 %s615_s2, 4  ;;  %s22_s29 = int_to_ptr.vmem [resolvable:$true] %s21_s29  ;;  %s43_s7 = int_to_ptr.hbm [resolvable:$true] %s42_s7 }
   0x8   :  { %24 = dma.hbm_to_vmem [thread:$0]  %s20_s25, 128, %s22_s29, [#allocation3]  }
   0x9   :  { %s55_s9 = sshll.u32 %s616_s3, 4  ;;  %s556_s10 = smov [#allocation7]   ;;  %s56_s9 = int_to_ptr.hbm [resolvable:$true] %s55_s9 }
   0xa   :  { %s44_s11 = sshll.u32 %s556_s10, 4  ;;  %s557_s0 = smov [#allocation8]   ;;  %s45_s11 = int_to_ptr.vmem [resolvable:$true] %s44_s11 }
   0xb   :  { %50 = dma.hbm_to_vmem [thread:$0]  %s43_s7, 1024, %s45_s11, [#allocation6], %s553_s26, %s553_s26, %s554_s27  }
   0xc   :  { %s57_s12 = sshll.u32 %s557_s0, 4  ;;  %s58_s12 = int_to_ptr.vmem [resolvable:$true] %s57_s12 }
   0xd   :  { %63 = dma.hbm_to_vmem [thread:$0]  %s56_s9, 1024, %s58_s12, [#allocation9], %s553_s26, %s553_s26, %s554_s27  }
   0xe   :  { %544 = dma.done.wait [#allocation3], 128  }
   0xf   :  { %545 = vsyncadd [#allocation3], 4294967168 }
  0x10   :  { %546 = dma.done.wait [#allocation6], 1280  }
  0x11   :  { %547 = vsyncadd [#allocation6], 4294966016 }
  0x12   :  { %548 = dma.done.wait [#allocation9], 1024  }
  0x13   :  { %549 = vsyncadd [#allocation9], 4294966272  ;;  %v393_v0 = vld [vmem:[#allocation5 + $0x8] sm:$0xff]  ;;  %v392_v2 = vld [vmem:[#allocation5] sm:$0xff]  ;;  %vm105_vm0 = vcmask 261120   ;;  %s558_s17 = smov [#allocation10]  }
  0x14   :  { %v401_v1 = vld [vmem:[#allocation7 + $0x38] sm:$0xff]  ;;  %115 = vmatpush.bf16.msra.mxu0 %v393_v0  ;;  %v83_v3 = vld [vmem:[#allocation2] sm:$0xff]  ;;  %v400_v4 = vld [vmem:[#allocation7 + $0x30] sm:$0xff]  ;;  %s305_s18 = sshll.u32 %s558_s17, 4  ;;  %s307_s21 = sshll.u32 %s618_s5, 4  ;;  %s306_s18 = int_to_ptr.vmem [resolvable:$true] %s305_s18  ;;  %s308_s21 = int_to_ptr.hbm [resolvable:$true] %s307_s21 }
  0x15   :  { %192 = vmatpush.bf16.msra.mxu1 %v401_v1  ;;  %v84_v5 = vpack.c.bf16 %v83_v3, %v83_v3  ;;  %v399_v6 = vld [vmem:[#allocation7 + $0x28] sm:$0xff]  ;;  %v398_v7 = vld [vmem:[#allocation7 + $0x20] sm:$0xff]  ;;  %v397_v8 = vld [vmem:[#allocation7 + $0x18] sm:$0xff] }
  0x16   :  { %v396_v9 = vld [vmem:[#allocation7 + $0x10] sm:$0xff]  ;;  %v395_v10 = vld [vmem:[#allocation7 + $0x8] sm:$0xff]  ;;  %v394_v11 = vld [vmem:[#allocation7] sm:$0xff] }
  0x17   :  { %v409_v12 = vld [vmem:[#allocation8 + $0x38] sm:$0xff]  ;;  %v408_v13 = vld [vmem:[#allocation8 + $0x30] sm:$0xff]  ;;  %v407_v14 = vld [vmem:[#allocation8 + $0x28] sm:$0xff] }
  0x18   :  { %116 = vmatpush.bf16.msra.mxu0 %v392_v2  ;;  %271 = vmatpush.bf16.msra.mxu2 %v409_v12  ;;  %v406_v15 = vld [vmem:[#allocation8 + $0x20] sm:$0xff]  ;;  %v405_v16 = vld [vmem:[#allocation8 + $0x18] sm:$0xff]  ;;  %v404_v17 = vld [vmem:[#allocation8 + $0x10] sm:$0xff] }
  0x19   :  { %193 = vmatpush.bf16.msra.mxu1 %v400_v4  ;;  %v417_v18 = vld [vmem:[%s617_s4] ss:$0 sm:$0xff]  ;;  %v402_v25 = vld [vmem:[#allocation8] sm:$0xff]  ;;  %v418_v26 = vld [vmem:[%s617_s4 + $0x1] ss:$0 sm:$0xff] }
  0x1a   :  { %v403_v24 = vld [vmem:[#allocation8 + $0x8] sm:$0xff] }
  0x1b   :  { %327 = vmatmul.msk.bf16.vlgmr.msra.gmra.mxu0 %vm105_vm0, %v84_v5  ;;  %v419_v32 = vld [vmem:[%s617_s4 + $0x2] ss:$0 sm:$0xff] }
  0x1c   :  { %272 = vmatpush.bf16.msra.mxu2 %v408_v13 }
  0x1d   :  { %194 = vmatpush.bf16.msra.mxu1 %v399_v6 }
  0x20   :  { %273 = vmatpush.bf16.msra.mxu2 %v407_v14 }
  0x21   :  { %195 = vmatpush.bf16.msra.mxu1 %v398_v7 }
  0x24   :  { %274 = vmatpush.bf16.msra.mxu2 %v406_v15 }
  0x25   :  { %196 = vmatpush.bf16.msra.mxu1 %v397_v8 }
  0x28   :  { %275 = vmatpush.bf16.msra.mxu2 %v405_v16 }
  0x29   :  { %197 = vmatpush.bf16.msra.mxu1 %v396_v9 }
  0x2c   :  { %276 = vmatpush.bf16.msra.mxu2 %v404_v17 }
  0x2d   :  { %198 = vmatpush.bf16.msra.mxu1 %v395_v10 }
  0x30   :  { %277 = vmatpush.bf16.msra.mxu2 %v403_v24 }
  0x31   :  { %199 = vmatpush.bf16.msra.mxu1 %v394_v11 }
  0x34   :  { %278 = vmatpush.bf16.msra.mxu2 %v402_v25 }
  0x98   :  { %v118_v19 = vpop.f32.mrf.mxu0 }
  0x99   :  { %v119_v20 = vadd.f32 %v417_v18, %v118_v19 }
  0x9b   :  { %v122_v21 = vmax.f32 %v119_v20, 0.0 }
  0x9d   :  { %v123_v22 = vpack.c.bf16 %v122_v21, %v122_v21 }
  0x9f   :  { %200 = vmatmul.bf16.vlgmr.msra.gmra.mxu1 %v123_v22 }
  0xa0   :  { %v120_v23 = vpop.f32.mrf.mxu0 }
 0x11c   :  { %v201_v27 = vpop.f32.mrf.mxu1 }
 0x11d   :  { %v202_v28 = vadd.f32 %v418_v26, %v201_v27 }
 0x11f   :  { %v205_v29 = vmax.f32 %v202_v28, 0.0 }
 0x121   :  { %v206_v30 = vpack.c.bf16 %v205_v29, %v205_v29 }
 0x123   :  { %279 = vmatmul.bf16.vlgmr.msra.gmra.mxu2 %v206_v30 }
 0x124   :  { %v203_v31 = vpop.f32.mrf.mxu1 }
 0x1a6   :  { %v280_v33 = vpop.f32.mrf.mxu2 }
 0x1a7   :  { %v284_v34 = vmul.f32 1.4285715, %v280_v33 }
 0x1a9   :  { %v289_v35 = vadd.f32 %v419_v32, %v284_v34 }
 0x1ab   :  { %290 = vmax.xlane.f32.xlu0 %v289_v35 }
 0x1ae   :  { %v282_v36 = vpop.f32.mrf.mxu2 }
 0x21e   :  { %v291_v37 = vpop.xlane.xlu0 %290 }
 0x21f   :  { %v292_v38 = vsub.f32 %v289_v35, %v291_v37 }
 0x221   :  { %v293_v39 = vmul.f32 1.442695, %v292_v38 }
 0x223   :  { %420 = vpow2.f32 %v293_v39 }
 0x229   :  { %v421_v40 = vpop.eup %420 }
 0x22a   :  { %295 = vadd.xlane.f32.xlu0 %v421_v40 }
 0x29d   :  { %v296_v41 = vpop.xlane.xlu0 %295 }
 0x29e   :  { %422 = vrcp.f32 %v296_v41 }
 0x2a4   :  { %v423_v42 = vpop.eup %422 }
 0x2a5   :  { %v298_v43 = vmul.f32 %v423_v42, %v421_v40 }
 0x2a7   :  { %299 = vst [vmem:[#allocation10] sm:$0xff] %v298_v43 }
 0x2a8   :  { %310 = dma.vmem_to_hbm [thread:$0]  %s306_s18, 128, %s308_s21, [#allocation4]  }
 0x2a9   :  { %550 = dma.done.wait [#allocation4], 128  }
 0x2aa   :  { %551 = vsyncadd [#allocation4], 4294967168 }
 0x2ab   :  { %315 = vsyncpa [#allocation3], 1 }
 0x2ac   :  { %316 = vsyncpa [#allocation6], 1 }
 0x2ad   :  { %317 = vsyncpa [#allocation9], 1 }
 0x2ae   :  { %318 = vsyncpa [#allocation4], 1 }

</bundles_post_ra>
